<compile_context>
chip_gen: v6e
topology: v6e:2x2x1
jax: 0.10.0
libtpu: 0.0.40
codegen_flags: <defaults>
</compile_context>

<pallas_src>
import functools

import numpy as np
import jax
import jax.numpy as jnp
from jax import lax
from jax.experimental import pallas as pl
from jax.experimental.pallas import tpu as pltpu

# bf16 operands = native MXU rate on v5e/v6e/v7x and half the operand bytes.
# All accumulation (preferred_element_type) and all norm statistics stay f32.
_MXU_DTYPE = jnp.bfloat16


def _dot(a, b):
    """MXU matmul with _MXU_DTYPE operands and f32 accumulation."""
    return jnp.dot(a.astype(_MXU_DTYPE), b.astype(_MXU_DTYPE),
                   preferred_element_type=jnp.float32)


# ----------------------------------------------------------------------------
# pltpu.roll convention probe (run once, outside jit).
# ----------------------------------------------------------------------------
_ROLL_MATCHES_NP = None


def _probe_roll_convention():
    """pltpu.roll is expected to match np.roll (out[i] = x[i - shift]).  Verify once
    on-device so the 3x3-conv row-shift direction can never silently flip."""
    global _ROLL_MATCHES_NP
    if _ROLL_MATCHES_NP is None:
        def k(x_ref, o_ref):
            o_ref[...] = pltpu.roll(x_ref[...], 1, axis=0)
        x = jnp.arange(8 * 128, dtype=jnp.float32).reshape(8, 128)
        y = pl.pallas_call(k, out_shape=jax.ShapeDtypeStruct((8, 128), jnp.float32))(x)
        _ROLL_MATCHES_NP = bool(jnp.allclose(y, jnp.roll(x, 1, axis=0)))
    return _ROLL_MATCHES_NP


# ----------------------------------------------------------------------------
# Fused kernel: B_BLK batch images per grid step, everything resident in VMEM.
# ----------------------------------------------------------------------------
def _up_fused_kernel(x1_ref, x2_ref, v_ref, r_ref, p2_ref, upb_ref,
                     m1_ref, b1_ref, m2_ref, b2_ref, chn_ref,
                     seg_ref, segt_ref, mtop_ref, mbot_ref,
                     o_ref, *, inv_n, sh_prev, sh_next):
    f32 = jnp.float32
    nrows = o_ref.shape[0]                 # B_BLK * H2 (batch-folded fine rows)

    x1b = x1_ref[...]                      # (B*H1, W1*C)  folded coarse rows (bf16)
    x2b = x2_ref[...]                      # (B*H2, W2*C)  folded skip rows   (bf16)
    upb = upb_ref[...]                     # (1, W2*2C)    f32

    # --- ConvTranspose2d(C, C, 2, stride=2): one folded matmul per row parity ---
    y0 = _dot(x1b, v_ref[0]) + upb         # (B*H1, W2*2C) f32
    y1 = _dot(x1b, v_ref[1]) + upb

    # --- F.pad + row interleave + torch.cat([x2, up], channel) ------------------
    # R_k are block-diagonal (per image) 0/1 row scatters; P2 places x2 into the
    # first C channel slots of every folded pixel.
    cat = _dot(r_ref[0], y0) + _dot(r_ref[1], y1) + _dot(x2b, p2_ref[...])

    mtop = mtop_ref[...]                   # (rows,1): 0 at first row of each image
    mbot = mbot_ref[...]                   # (rows,1): 0 at last  row of each image
    seg = seg_ref[...]                     # (B,rows)  per-image row-sum fold (f32)
    segt = segt_ref[...]                   # (rows,B)  broadcast back         (f32)
    chn = chn_ref[...]                     # (Wc,Wc)   per-channel fold/broadcast

    def conv_in_relu(x, m_ref, b_row):
        # 3x3 'same' conv: kx taps / zero column-padding are folded into the banded
        # M planes; the +-1 row shifts are XLU sublane rolls with per-image boundary
        # rows zeroed (replaces the old unaligned padded-scratch slices).
        x_prev = pltpu.roll(x, sh_prev, axis=0) * mtop     # out row r sees row r-1
        x_next = pltpu.roll(x, sh_next, axis=0) * mbot     # out row r sees row r+1
        acc = (_dot(x_prev, m_ref[0]) + _dot(x, m_ref[1]) + _dot(x_next, m_ref[2])
               + b_row)                                    # (rows, Wc) f32

        # InstanceNorm2d(affine=False), per image, statistics entirely in f32.
        # H-reduction FIRST (tiny per-image block-row-sum matmul, M = B_BLK), THEN
        # the small `chn` channel fold -- instead of two full (rows x Wc) matmuls.
        sums = jnp.dot(seg, acc, preferred_element_type=f32)         # (B, Wc)
        ssqs = jnp.dot(seg, acc * acc, preferred_element_type=f32)   # (B, Wc)
        mean = jnp.dot(sums, chn, preferred_element_type=f32) * inv_n
        ex2 = jnp.dot(ssqs, chn, preferred_element_type=f32) * inv_n
        rstd = lax.rsqrt(ex2 - mean * mean + 1e-5)
        b_mean = jnp.dot(segt, mean, preferred_element_type=f32)     # (rows, Wc)
        b_rstd = jnp.dot(segt, rstd, preferred_element_type=f32)
        return jnp.maximum((acc - b_mean) * b_rstd, 0.0)

    h = conv_in_relu(cat, m1_ref, b1_ref[...])
    h = conv_in_relu(h, m2_ref, b2_ref[...])
    o_ref[...] = h.astype(o_ref.dtype)     # lane-dense store (last dim = W2*Cout)


# ----------------------------------------------------------------------------
# Weight-only precompute (done once at model-load time in practice).
# ----------------------------------------------------------------------------
def _build_up_matrices(up_w, up_b, H1, W1, H2, W2):
    """ConvTranspose2d(2x2, stride 2) + F.pad + concat placement as matrices."""
    f32 = jnp.float32
    C = up_w.shape[0]
    C2 = 2 * C
    padT = (H2 - 2 * H1) // 2
    padL = (W2 - 2 * W1) // 2

    xs = jnp.arange(W2)
    js = jnp.arange(W1)
    v_planes = []
    for ki in range(2):
        v = jnp.zeros((W1, C, W2, C), f32)
        for kj in range(2):
            col = (xs[None, :] == (2 * js + kj + padL)[:, None]).astype(f32)     # (W1, W2)
            v = v + jnp.einsum('jx,io->jixo', col, up_w[:, :, ki, kj].astype(f32))
        v = jnp.pad(v, ((0, 0), (0, 0), (0, 0), (C, 0)))   # channel slots C..2C-1
        v_planes.append(v.reshape(W1 * C, W2 * C2))
    V = jnp.stack(v_planes)                                                       # (2, W1*C, W2*2C)

    ys = jnp.arange(H2)
    i_ = jnp.arange(H1)
    R = jnp.stack([(ys[:, None] == (2 * i_ + k + padT)[None, :]).astype(f32)
                   for k in range(2)])                                            # (2, H2, H1)

    sel_x2 = jnp.pad(jnp.eye(C, dtype=f32), ((0, 0), (0, C)))
    P2 = jnp.einsum('xu,ic->xiuc', jnp.eye(W2, dtype=f32), sel_x2).reshape(W2 * C, W2 * C2)

    covered = ((xs >= padL) & (xs < padL + 2 * W1)).astype(f32)
    upb = (covered[:, None]
           * jnp.concatenate([jnp.zeros((C,), f32), up_b.astype(f32)])[None, :]
           ).reshape(1, W2 * C2)
    return V, R, P2, upb


def _build_conv3x3_matrices(w, b, W):
    """3x3 'same' conv as 3 banded matrices over lane-folded rows (w: HWIO)."""
    f32 = jnp.float32
    Cin, Cout = w.shape[2], w.shape[3]
    u = jnp.arange(W)
    planes = []
    for ky in range(3):
        m = jnp.zeros((W, Cin, W, Cout), f32)
        for kx in range(3):
            shift = (u[:, None] == (u[None, :] + kx - 1)).astype(f32)             # (W_in, W_out)
            m = m + jnp.einsum('uw,io->uiwo', shift, w[ky, kx].astype(f32))
        planes.append(m.reshape(W * Cin, W * Cout))
    M = jnp.stack(planes)                                                          # (3, W*Cin, W*Cout)
    b_row = jnp.tile(b.astype(f32), (W,)).reshape(1, W * Cout)
    return M, b_row


def prepare_up_params(params, x1_shape, x2_shape, b_blk):
    """Weight-only transform of the PyTorch parameters into the folded matrices."""
    N, C, H1, W1 = x1_shape
    _, _, H2, W2 = x2_shape
    # The selector matrices encode non-negative F.pad with the top/left = diff//2
    # split; fail loudly on anything else instead of silently producing garbage.
    assert H2 >= 2 * H1 and W2 >= 2 * W1, "up(): x2 must be spatially >= up(x1)"
    assert N % b_blk == 0, "batch must be divisible by the batch block"
    Cout = params["c1_w"].shape[-1]

    V, R, P2, upb = _build_up_matrices(params["up_w"], params["up_b"], H1, W1, H2, W2)
    # Block-diagonal row scatter over the batch fold: kron(I_B, R_k).
    Rb = jnp.stack([jnp.kron(jnp.eye(b_blk, dtype=jnp.float32), R[k]) for k in range(2)])
    M1, b1 = _build_conv3x3_matrices(params["c1_w"], params["c1_b"], W2)
    M2, b2 = _build_conv3x3_matrices(params["c2_w"], params["c2_b"], W2)

    # Statistic-path matrices stay f32 (InstanceNorm stats must not be quantized).
    chn = jnp.tile(jnp.eye(Cout, dtype=jnp.float32), (W2, W2))      # (Wc, Wc)
    rows = b_blk * H2
    r = np.arange(rows)
    seg = (r[None, :] // H2 == np.arange(b_blk)[:, None]).astype(np.float32)   # (B, rows)
    mtop = (r % H2 != 0).astype(np.float32)[:, None]                            # (rows, 1)
    mbot = (r % H2 != H2 - 1).astype(np.float32)[:, None]

    _probe_roll_convention()    # cache the roll direction once, outside jit

    mx = _MXU_DTYPE
    return dict(V=V.astype(mx), R=Rb.astype(mx), P2=P2.astype(mx), upb=upb,
                M1=M1.astype(mx), b1=b1, M2=M2.astype(mx), b2=b2,
                chn=chn, seg=jnp.asarray(seg),
                segT=jnp.asarray(np.ascontiguousarray(seg.T)),
                mtop=jnp.asarray(mtop), mbot=jnp.asarray(mbot))


# ----------------------------------------------------------------------------
# Full `up` forward (PyTorch NCHW in/out), one fused pallas_call.
# ----------------------------------------------------------------------------
def up_forward(x1_nchw, x2_nchw, prepared, b_blk=4):
    N, C, H1, W1 = x1_nchw.shape
    _, _, H2, W2 = x2_nchw.shape
    C2 = 2 * C
    Cout = prepared["b1"].shape[1] // W2
    Wc = W2 * Cout
    rows1, rows2 = b_blk * H1, b_blk * H2

    # Lane-folded (channels into lanes) + batch-folded (image rows into sublanes)
    # 2-D slabs: matmuls run with M = B_BLK*H rows and grid overhead is amortized.
    x1f = (jnp.transpose(x1_nchw, (0, 2, 3, 1))
           .reshape(N * H1, W1 * C).astype(_MXU_DTYPE))
    x2f = (jnp.transpose(x2_nchw, (0, 2, 3, 1))
           .reshape(N * H2, W2 * C).astype(_MXU_DTYPE))

    roll_np = _ROLL_MATCHES_NP if _ROLL_MATCHES_NP is not None else True
    sh_prev = 1 if roll_np else rows2 - 1          # operand row r <- input row r-1
    sh_next = rows2 - 1 if roll_np else 1          # operand row r <- input row r+1

    kernel = functools.partial(_up_fused_kernel, inv_n=1.0 / float(H2 * W2),
                               sh_prev=sh_prev, sh_next=sh_next)

    const2 = lambda n: (0, 0)
    const3 = lambda n: (0, 0, 0)

    out = pl.pallas_call(
        kernel,
        out_shape=jax.ShapeDtypeStruct((N * H2, Wc), x1_nchw.dtype),
        grid=(N // b_blk,),
        in_specs=[
            pl.BlockSpec((rows1, W1 * C), lambda n: (n, 0)),   # x1 (folded)
            pl.BlockSpec((rows2, W2 * C), lambda n: (n, 0)),   # x2 (folded)
            # Grid-invariant weights: constant index_map => only DMA'd on step 0.
            # TODO(synk): at production widths single-buffer (pl.Buffered(1)) or
            # stage once via pl.ANY + DMA to halve weight VMEM (v7x: 64 MiB).
            pl.BlockSpec((2, W1 * C, W2 * C2), const3),        # V
            pl.BlockSpec((2, rows2, rows1), const3),           # R (block-diagonal)
            pl.BlockSpec((W2 * C, W2 * C2), const2),           # P2
            pl.BlockSpec((1, W2 * C2), const2),                # upb
            pl.BlockSpec((3, W2 * C2, Wc), const3),            # M1
            pl.BlockSpec((1, Wc), const2),                     # b1
            pl.BlockSpec((3, Wc, Wc), const3),                 # M2
            pl.BlockSpec((1, Wc), const2),                     # b2
            pl.BlockSpec((Wc, Wc), const2),                    # chn  (f32 stat path)
            pl.BlockSpec((b_blk, rows2), const2),              # seg
            pl.BlockSpec((rows2, b_blk), const2),              # segT
            pl.BlockSpec((rows2, 1), const2),                  # mtop
            pl.BlockSpec((rows2, 1), const2),                  # mbot
        ],
        out_specs=pl.BlockSpec((rows2, Wc), lambda n: (n, 0)),
        compiler_params=pltpu.CompilerParams(
            dimension_semantics=("parallel",)),                # >=2 steps: both v7x TCs
    )(x1f, x2f, prepared["V"], prepared["R"], prepared["P2"], prepared["upb"],
      prepared["M1"], prepared["b1"], prepared["M2"], prepared["b2"], prepared["chn"],
      prepared["seg"], prepared["segT"], prepared["mtop"], prepared["mbot"])

    return jnp.transpose(out.reshape(N, H2, W2, Cout), (0, 3, 1, 2))   # back to NCHW


# ----------------------------------------------------------------------------
# Pure-JAX reference (same math, lax conv) used as a correctness check.
# ----------------------------------------------------------------------------
def ref_forward(x1_nchw, x2_nchw, p):
    x1 = jnp.transpose(x1_nchw, (0, 2, 3, 1))
    x2 = jnp.transpose(x2_nchw, (0, 2, 3, 1))
    N, H, W, C = x1.shape
    up = jnp.einsum("nhwi,iokl->nhkwlo", x1, p["up_w"],
                    precision=lax.Precision.HIGHEST).reshape(N, 2 * H, 2 * W, C)
    up = up + p["up_b"]
    x = jnp.concatenate([x2, up], axis=-1)

    def conv_in_relu(x, w, b):
        y = lax.conv_general_dilated(
            x, w, (1, 1), "SAME",
            dimension_numbers=("NHWC", "HWIO", "NHWC"),
            precision=lax.Precision.HIGHEST) + b
        m = y.mean(axis=(1, 2), keepdims=True)
        v = ((y - m) ** 2).mean(axis=(1, 2), keepdims=True)
        return jnp.maximum((y - m) * lax.rsqrt(v + 1e-5), 0.0)

    x = conv_in_relu(x, p["c1_w"], p["c1_b"])
    x = conv_in_relu(x, p["c2_w"], p["c2_b"])
    return jnp.transpose(x, (0, 3, 1, 2))


if __name__ == "__main__":
    # Shapes consistent with the module: in_ch = 8 => x1/x2 each carry 4 channels.
    in_ch, out_ch = 8, 8
    C = in_ch // 2
    N, H1, W1 = 8, 8, 8        # x1 spatial (gets upsampled 2x)
    H2, W2 = 2 * H1, 2 * W1    # x2 spatial (folded output width W2*out_ch = 128)
    B_BLK = 4                  # 4 images per grid step -> M = 64 rows; grid = (2,)

    key = jax.random.PRNGKey(0)
    ks = jax.random.split(key, 8)
    x1 = jax.random.normal(ks[0], (N, C, H1, W1), jnp.float32)   # NCHW like PyTorch
    x2 = jax.random.normal(ks[1], (N, C, H2, W2), jnp.float32)

    # Deterministic synthetic parameters (PyTorch shapes; conv weights in HWIO):
    params = dict(
        up_w=jax.random.normal(ks[2], (C, C, 2, 2), jnp.float32) * 0.2,
        up_b=jax.random.normal(ks[3], (C,), jnp.float32) * 0.1,
        c1_w=jax.random.normal(ks[4], (3, 3, in_ch, out_ch), jnp.float32) * 0.1,
        c1_b=jax.random.normal(ks[5], (out_ch,), jnp.float32) * 0.1,
        c2_w=jax.random.normal(ks[6], (3, 3, out_ch, out_ch), jnp.float32) * 0.1,
        c2_b=jax.random.normal(ks[7], (out_ch,), jnp.float32) * 0.1,
    )

    prepared = prepare_up_params(params, x1.shape, x2.shape, B_BLK)  # weight-only, once
    fwd = jax.jit(functools.partial(up_forward, b_blk=B_BLK))
    out = jax.block_until_ready(fwd(x1, x2, prepared))
    assert out.shape == (N, out_ch, H2, W2), out.shape

    ref = jax.block_until_ready(ref_forward(x1, x2, params))
    # bf16 MXU operands (f32 accumulation / f32 norm stats): tolerance sized for that.
    tol = 2e-2 if _MXU_DTYPE == jnp.float32 else 6e-2
    np.testing.assert_allclose(np.asarray(out), np.asarray(ref), rtol=tol, atol=tol)

    print("KERNEL_OK")
</pallas_src>

<mosaic_0001>
module attributes {stable_mosaic.version = 11 : i64} {
  func.func @k(%arg0: memref<8x128xf32, #tpu.memory_space<vmem>>, %arg1: memref<8x128xf32, #tpu.memory_space<vmem>>) attributes {dimension_semantics = [], scalar_prefetch = 0 : i64, scratch_operands = 0 : i64, tpu.core_type = #tpu.core_type<tc>} {
    %c0 = arith.constant 0 : index
    %c0_0 = arith.constant 0 : index
    %0 = vector.load %arg0[%c0, %c0_0] : memref<8x128xf32, #tpu.memory_space<vmem>>, vector<8x128xf32>
    %c1_i32 = arith.constant 1 : i32
    %1 = tpu.dynamic_rotate %0 by %c1_i32 dim 0 : vector<8x128xf32>, i32 -> vector<8x128xf32>
    %c0_1 = arith.constant 0 : index
    %c0_2 = arith.constant 0 : index
    %2 = vector.load %arg1[%c0_1, %c0_2] : memref<8x128xf32, #tpu.memory_space<vmem>>, vector<8x128xf32>
    tpu.vector_store %arg1[%c0_1, %c0_2], %1 {strides = array<i32>} : memref<8x128xf32, #tpu.memory_space<vmem>>, vector<8x128xf32>,
    return
  }
}

</mosaic_0001>

<bundles_post_ra>
// kernel: tpu_custom_call.1
= control target key start
LH: loop header
LB: loop body
LE: loop exit
PB: predicated region body
PF: predicated region fallthrough
CT: control target
= control target key end

     0   :  { %6 = vsyncpa [#allocation3], 0  ;;  %s103_s0 = inlined_call_operand.hbm [shape: f32[8,128], index: 0, kind: input, shape index: {}]   ;;  %s104_s1 = inlined_call_operand.hbm [shape: f32[8,128], index: 1, kind: output, shape index: {}]  }
   0x1   :  { %7 = vsyncpa [#allocation4], 0  ;;  %s85_s6 = smov [#allocation2]  }
   0x2   :  { %s14_s7 = sshll.u32 %s85_s6, 4  ;;  %s15_s7 = int_to_ptr.vmem [resolvable:$true] %s14_s7 }
   0x3   :  { %s49_s8 = scalar_lea.vmem %s15_s7, 128  ;;  %p54_p1 = scmp.lt.s32.totalorder %s15_s7, %s15_s7 }
   0x4   :  { %p50_p0 = scmp.ne.s32.totalorder %s15_s7, %s49_s8  ;;  %p55_p2 = scmp.lt.s32.totalorder %s49_s8, %s49_s8 }
   0x6   :  { %p56_p3 = por %p55_p2, %p54_p1 }
   0x8   :  { %p57_p4 = pnand %p56_p3, %p50_p0 }
   0xa   :  { %60 = shalt.err (!%p57_p4)
}
   0xb   :  { %17 = dma.hbm_to_vmem [thread:$0]  %s103_s0, 128, %s15_s7, [#allocation3]  }
   0xc   :  { %81 = dma.done.wait [#allocation3], 128  }
   0xd   :  { %82 = vsyncadd [#allocation3], 4294967168  ;;  %s86_s11 = smov [#allocation5]   ;;  %v21_v0 = vld [vmem:[#allocation2] sm:$0xff] }
   0xe   :  { %s30_s12 = sshll.u32 %s86_s11, 4  ;;  %v22_v1 = vrot.slane %v21_v0, 7  ;;  %s31_s12 = int_to_ptr.vmem [resolvable:$true] %s30_s12 }
   0xf   :  { %s61_s13 = scalar_lea.vmem %s31_s12, 128  ;;  %p66_p6 = scmp.lt.s32.totalorder %s31_s12, %s31_s12 }
  0x10   :  { %23 = vst [vmem:[#allocation5] sm:$0xff] %v22_v1  ;;  %p62_p5 = scmp.ne.s32.totalorder %s31_s12, %s61_s13  ;;  %p67_p7 = scmp.lt.s32.totalorder %s61_s13, %s61_s13 }
  0x12   :  { %p68_p8 = por %p67_p7, %p66_p6 }
  0x14   :  { %p69_p9 = pnand %p68_p8, %p62_p5 }
  0x16   :  { %72 = shalt.err (!%p69_p9)
}
  0x17   :  { %33 = dma.vmem_to_hbm [thread:$0]  %s31_s12, 128, %s104_s1, [#allocation4]  }
  0x18   :  { %83 = dma.done.wait [#allocation4], 128  }
  0x19   :  { %84 = vsyncadd [#allocation4], 4294967168 }
  0x1a   :  { %37 = vsyncpa [#allocation3], 1 }
  0x1b   :  { %38 = vsyncpa [#allocation4], 1 }

</bundles_post_ra>
